<compile_context>
chip_gen: v7x
topology: tpu7x:2x2x1
jax: 0.10.0
libtpu: 0.0.40
codegen_flags: <defaults>
</compile_context>

<pallas_src>
import jax
import jax.numpy as jnp
from jax.experimental import pallas as pl
from jax.experimental.pallas import tpu as pltpu

_LANE = 512                      # lane-dense last dim (multiple of 128)
_TARGET_BLOCK_BYTES = 2 * 1024 * 1024  # ~2 MiB per block


def _identity_kernel(x_ref, o_ref):
    # Pure pass-through of the current VMEM tile.
    o_ref[...] = x_ref[...]


def _sublane_multiple(dtype) -> int:
    # 8 rows for 4-byte dtypes, 16 for 2-byte, 32 for 1-byte (packed sublanes).
    itemsize = jnp.dtype(dtype).itemsize
    return max(8, 32 // max(itemsize, 1))


def _round_up(a: int, b: int) -> int:
    return ((a + b - 1) // b) * b


def identity(x: jax.Array) -> jax.Array:
    """Identity forward pass implemented as a Pallas TPU kernel."""
    orig_shape = x.shape
    orig_dtype = x.dtype

    n = int(x.size)
    if n == 0:
        # Nothing to copy; launching a kernel on an empty array is pointless.
        return x

    flat = x.reshape(-1)

    itemsize = jnp.dtype(orig_dtype).itemsize
    sub = _sublane_multiple(orig_dtype)

    # Re-tile the flat array as (rows, _LANE), lane-dense.
    rows = pl.cdiv(n, _LANE)

    # Row tile: largest multiple of the sublane granularity that keeps the
    # block around _TARGET_BLOCK_BYTES (4x block bytes stays well under every
    # generation's scoped-VMEM default).
    target_rows = max(sub, _TARGET_BLOCK_BYTES // (_LANE * itemsize))
    target_rows = max(sub, (target_rows // sub) * sub)

    rows_padded = _round_up(rows, sub)
    tr = min(target_rows, rows_padded)
    # Pad rows to a multiple of the tile so every block is full (no ragged
    # last block, no whole-array fallback for odd sizes).
    rows_padded = _round_up(rows_padded, tr)

    n_padded = rows_padded * _LANE
    if n_padded != n:
        flat = jnp.pad(flat, (0, n_padded - n))
    x2 = flat.reshape(rows_padded, _LANE)

    grid = (rows_padded // tr,)

    out2 = pl.pallas_call(
        _identity_kernel,
        out_shape=jax.ShapeDtypeStruct((rows_padded, _LANE), orig_dtype),
        grid_spec=pltpu.PrefetchScalarGridSpec(
            num_scalar_prefetch=0,
            grid=grid,
            in_specs=[pl.BlockSpec((tr, _LANE), lambda i: (i, 0))],
            out_specs=pl.BlockSpec((tr, _LANE), lambda i: (i, 0)),
        ),
        compiler_params=pltpu.CompilerParams(
            dimension_semantics=("parallel",),
            vmem_limit_bytes=32 * 1024 * 1024,
        ),
        # Allow XLA to reuse the input HBM buffer for the output when it can
        # be donated (identity never needs a second buffer).
        input_output_aliases={0: 0},
    )(x2)

    return out2.reshape(-1)[:n].reshape(orig_shape)


if __name__ == "__main__":
    key = jax.random.PRNGKey(0)
    # Small NCHW-style input consistent with the module's intended usage.
    x = jax.random.normal(key, (2, 4, 16, 16), dtype=jnp.float32)

    y = identity(x)
    jax.block_until_ready(y)

    assert y.shape == x.shape and y.dtype == x.dtype
    assert bool(jnp.all(y == x))

    # Also exercise a size that is not a multiple of the lane re-tiling and a
    # narrow dtype, to cover the padded / dtype-aware paths.
    x2 = jax.random.normal(key, (3, 5, 7, 11), dtype=jnp.bfloat16)
    y2 = identity(x2)
    jax.block_until_ready(y2)
    assert y2.shape == x2.shape and y2.dtype == x2.dtype
    assert bool(jnp.all(y2 == x2))

    print("KERNEL_OK")
</pallas_src>

<mosaic_0001>
module attributes {stable_mosaic.version = 11 : i64} {
  func.func @_identity_kernel(%arg0: i32, %arg1: memref<8x512xf32, #tpu.memory_space<vmem>>, %arg2: memref<8x512xf32, #tpu.memory_space<vmem>>) attributes {dimension_semantics = [#tpu.dimension_semantics<parallel>], iteration_bounds = array<i64: 1>, scalar_prefetch = 0 : i64, scratch_operands = 0 : i64, tpu.core_type = #tpu.core_type<tc>, window_params = [{transform_indices = @transform_0, window_bounds = array<i64: 8, 512>}, {transform_indices = @transform_1, window_bounds = array<i64: 8, 512>}]} {
    %c0 = arith.constant 0 : index
    %c0_0 = arith.constant 0 : index
    %0 = vector.load %arg1[%c0, %c0_0] : memref<8x512xf32, #tpu.memory_space<vmem>>, vector<8x512xf32>
    %c0_1 = arith.constant 0 : index
    %c0_2 = arith.constant 0 : index
    %1 = vector.load %arg2[%c0_1, %c0_2] : memref<8x512xf32, #tpu.memory_space<vmem>>, vector<8x512xf32>
    tpu.vector_store %arg2[%c0_1, %c0_2], %0 {strides = array<i32>} : memref<8x512xf32, #tpu.memory_space<vmem>>, vector<8x512xf32>,
    return
  }
  func.func @transform_0(%arg0: i32) -> (i32, i32) {
    %c0_i32 = arith.constant 0 : i32
    %c0_i32_0 = arith.constant 0 : i32
    return %arg0, %c0_i32 : i32, i32
  }
  func.func @transform_1(%arg0: i32) -> (i32, i32) {
    %c0_i32 = arith.constant 0 : i32
    %c0_i32_0 = arith.constant 0 : i32
    return %arg0, %c0_i32 : i32, i32
  }
}

</mosaic_0001>

<bundles_post_ra>
// kernel: tpu_custom_call.1
= control target key start
LH: loop header
LB: loop body
LE: loop exit
PB: predicated region body
PF: predicated region fallthrough
CT: control target
= control target key end

     0   :  { %6 = vsyncpa [#allocation3], 0  ;;  %s130_s0 = inlined_call_operand.hbm [shape: f32[8,512], index: 0, kind: input, shape index: {}, may-alias: {0,1}]   ;;  %s131_s1 = inlined_call_operand.hbm [shape: f32[8,512], index: 1, kind: output, shape index: {}, may-alias: {0,1}]  }
   0x1   :  { %7 = vsyncpa [#allocation4], 0  ;;  %s94_s6 = smov [#allocation2]   ;;  %s46_s10 = scalar_lea.hbm %s130_s0, 512 }
   0x2   :  { %s14_s7 = sshll.u32 %s94_s6, 4  ;;  %p47_p0 = scmp.ne.s32.totalorder %s130_s0, %s46_s10  ;;  %s15_s7 = int_to_ptr.vmem [resolvable:$true] %s14_s7 }
   0x3   :  { %p50_p1 = scmp.lt.u32.totalorder %s46_s10, %s130_s0 }
   0x5   :  { %p52_p2 = pnand %p50_p1, %p47_p0 }
   0x7   :  { %55 = shalt.err (!%p52_p2)
}
   0x8   :  { %s56_s15 = scalar_lea.vmem %s15_s7, 512  ;;  %p61_p4 = scmp.lt.s32.totalorder %s15_s7, %s15_s7 }
   0x9   :  { %p57_p3 = scmp.ne.s32.totalorder %s15_s7, %s56_s15  ;;  %p62_p5 = scmp.lt.s32.totalorder %s56_s15, %s56_s15 }
   0xb   :  { %p63_p6 = por %p62_p5, %p61_p4 }
   0xd   :  { %p64_p7 = pnand %p63_p6, %p57_p3 }
   0xf   :  { %67 = shalt.err (!%p64_p7)
}
  0x10   :  { %17 = dma.hbm_to_vmem [thread:$0]  %s130_s0, 512, %s15_s7, [#allocation3]  }
  0x11   :  { %90 = dma.done.wait [#allocation3], 512  }
  0x12   :  { %91 = vsyncadd [#allocation3], 4294966784  ;;  %s95_s18 = smov [#allocation5]   ;;  %v21_v0 = vld [vmem:[#allocation2] sm:$0xff]  ;;  %v22_v1 = vld [vmem:[#allocation2 + $0x8] sm:$0xff] }
  0x13   :  { %s35_s19 = sshll.u32 %s95_s18, 4  ;;  %v23_v2 = vld [vmem:[#allocation2 + $0x10] sm:$0xff]  ;;  %25 = vst [vmem:[#allocation5] sm:$0xff] %v21_v0  ;;  %26 = vst [vmem:[#allocation5 + $0x8] sm:$0xff] %v22_v1  ;;  %v24_v3 = vld [vmem:[#allocation2 + $0x18] sm:$0xff]  ;;  %s36_s19 = int_to_ptr.vmem [resolvable:$true] %s35_s19 }
  0x14   :  { %27 = vst [vmem:[#allocation5 + $0x10] sm:$0xff] %v23_v2  ;;  %28 = vst [vmem:[#allocation5 + $0x18] sm:$0xff] %v24_v3  ;;  %s68_s20 = scalar_lea.vmem %s36_s19, 512  ;;  %p73_p9 = scmp.lt.s32.totalorder %s36_s19, %s36_s19 }
  0x15   :  { %p69_p8 = scmp.ne.s32.totalorder %s36_s19, %s68_s20  ;;  %p74_p10 = scmp.lt.s32.totalorder %s68_s20, %s68_s20 }
  0x17   :  { %p75_p11 = por %p74_p10, %p73_p9 }
  0x19   :  { %p76_p12 = pnand %p75_p11, %p69_p8 }
  0x1b   :  { %79 = shalt.err (!%p76_p12)
}
  0x1c   :  { %s80_s22 = scalar_lea.hbm %s131_s1, 512 }
  0x1d   :  { %p81_p13 = scmp.ne.s32.totalorder %s131_s1, %s80_s22  ;;  %p84_p0 = scmp.lt.u32.totalorder %s80_s22, %s131_s1 }
  0x1f   :  { %p86_p1 = pnand %p84_p0, %p81_p13 }
  0x21   :  { %89 = shalt.err (!%p86_p1)
}
  0x22   :  { %38 = dma.vmem_to_hbm [thread:$0]  %s36_s19, 512, %s131_s1, [#allocation4]  }
  0x23   :  { %92 = dma.done.wait [#allocation4], 512  }
  0x24   :  { %93 = vsyncadd [#allocation4], 4294966784 }
  0x25   :  { %42 = vsyncpa [#allocation3], 1 }
  0x26   :  { %43 = vsyncpa [#allocation4], 1 }

</bundles_post_ra>
